<compile_context>
chip_gen: v7x
topology: tpu7x:2x2x1
jax: 0.10.0
libtpu: 0.0.40
codegen_flags: <defaults>
</compile_context>

<pallas_src>
import functools
import math

import jax
import jax.numpy as jnp
from jax.experimental import pallas as pl
from jax.experimental.pallas import tpu as pltpu


# ----------------------------------------------------------------------------
# Pallas kernel: fused "valid" convolution (tap-loop of bf16 MXU matmuls) with
# bias + LeakyReLU(0.1) / per-channel PReLU fused in.
# ----------------------------------------------------------------------------
def _conv_kernel(x_ref, w_ref, b_ref, *rest, kh, kw, act):
    # x_ref: (N, Hp, Wp, Cin) f32    (already spatially padded)
    # w_ref: (kh*kw, Cin, Cout) bf16 (pre-packed, tap-major)
    # b_ref: (1, Cout) f32
    # a_ref: (1, Cout) f32           (only present for act == "prelu")
    # o_ref: (N*Ho*Wo, Cout) f32
    if act == "prelu":
        a_ref, o_ref = rest
    else:
        a_ref = None
        (o_ref,) = rest

    n, hp, wp, cin = x_ref.shape
    m, cout = o_ref.shape
    ho = hp - kh + 1
    wo = wp - kw + 1

    acc = jnp.zeros((m, cout), jnp.float32)
    for i in range(kh):
        for j in range(kw):
            xs = x_ref[:, i:i + ho, j:j + wo, :]          # (N, Ho, Wo, Cin) f32
            xs = xs.reshape(m, cin).astype(jnp.bfloat16)  # VMEM relayout only
            acc = acc + jnp.dot(xs, w_ref[i * kw + j],
                                preferred_element_type=jnp.float32)

    y = acc + b_ref[...]
    if act == "leaky":
        y = jnp.maximum(y, 0.1 * y)
    elif act == "prelu":
        y = jnp.where(y >= 0.0, y, a_ref[...] * y)
    o_ref[...] = y


@functools.partial(jax.jit, static_argnames=("taps", "pad", "s2d", "d2s", "act"))
def _conv_apply(x, w, b, a, *, taps, pad, s2d, d2s, act):
    """x: (N, H, W, Cin) f32 NHWC; w: (T, Cin', Cout) bf16 pre-packed."""
    N, H, W, _ = x.shape
    if pad:
        x = jnp.pad(x, ((0, 0), (pad, pad), (pad, pad), (0, 0)))
    if s2d:
        # stride-2 conv == stride-1 conv on the 2x2 space-to-depth input.
        _, Hp0, Wp0, C0 = x.shape
        assert Hp0 % 2 == 0 and Wp0 % 2 == 0
        x = x.reshape(N, Hp0 // 2, 2, Wp0 // 2, 2, C0)
        x = x.transpose(0, 1, 3, 2, 4, 5).reshape(N, Hp0 // 2, Wp0 // 2, 4 * C0)

    kh, kw = taps
    _, Hp, Wp, Cin = x.shape
    Ho, Wo = Hp - kh + 1, Wp - kw + 1
    Cout = w.shape[-1]
    M = N * Ho * Wo

    kernel = functools.partial(_conv_kernel, kh=kh, kw=kw, act=act)
    operands = [x, w, b]
    in_specs = [
        pl.BlockSpec(x.shape, lambda i: (0, 0, 0, 0)),
        pl.BlockSpec(w.shape, lambda i: (0, 0, 0)),
        pl.BlockSpec(b.shape, lambda i: (0, 0)),
    ]
    if act == "prelu":
        operands.append(a)
        in_specs.append(pl.BlockSpec(a.shape, lambda i: (0, 0)))

    y = pl.pallas_call(
        kernel,
        out_shape=jax.ShapeDtypeStruct((M, Cout), jnp.float32),
        grid=(1,),
        in_specs=in_specs,
        out_specs=pl.BlockSpec((M, Cout), lambda i: (0, 0)),
        compiler_params=pltpu.CompilerParams(
            dimension_semantics=("arbitrary",),
            vmem_limit_bytes=48 * 1024 * 1024,
        ),
    )(*operands)

    y = y.reshape(N, Ho, Wo, Cout)
    if d2s:
        # ConvTranspose phase outputs (2x2 phases stacked on channels) -> space.
        Cq = Cout // 4
        y = y.reshape(N, Ho, Wo, 2, 2, Cq).transpose(0, 1, 3, 2, 4, 5)
        y = y.reshape(N, 2 * Ho, 2 * Wo, Cq)
    return y


def conv_block(x, pk, act):
    return _conv_apply(x, pk["w"], pk["b"], pk["a"],
                       taps=pk["taps"], pad=pk["pad"],
                       s2d=pk["s2d"], d2s=pk["d2s"], act=act)


# ----------------------------------------------------------------------------
# One-time weight packing (done at parameter construction time).
# ----------------------------------------------------------------------------
def pack_conv(w, b, alpha=None, stride=1, pad=1):
    """w: (Cout, Cin, kh, kw) PyTorch layout -> pre-packed tap-major bf16."""
    Cout, Cin, kh, kw = w.shape
    if stride == 1:
        wp = jnp.transpose(w, (2, 3, 1, 0)).reshape(kh * kw, Cin, Cout)
        taps, s2d = (kh, kw), False
    else:  # stride 2, k=3, pad=1 -> 2x2-tap conv on space-to-depth input
        assert stride == 2 and kh == 3 and kw == 3
        tap_list = []
        for di in range(2):
            for dj in range(2):
                blocks = []
                for p in range(2):
                    for q in range(2):
                        i, j = 2 * di + p, 2 * dj + q
                        if i < kh and j < kw:
                            blocks.append(w[:, :, i, j].T)     # (Cin, Cout)
                        else:
                            blocks.append(jnp.zeros((Cin, Cout), w.dtype))
                tap_list.append(jnp.concatenate(blocks, axis=0))  # (4*Cin, Cout)
        wp = jnp.stack(tap_list, axis=0)
        taps, s2d = (2, 2), True
    if alpha is None:
        alpha = jnp.zeros((Cout,), jnp.float32)
    return {"w": wp.astype(jnp.bfloat16),
            "b": b.reshape(1, -1).astype(jnp.float32),
            "a": alpha.reshape(1, -1).astype(jnp.float32),
            "taps": taps, "pad": pad, "s2d": s2d, "d2s": False}


def pack_convT(w, b, alpha):
    """PyTorch ConvTranspose2d(k=4, s=2, p=1), w: (Cin, Cout, 4, 4).

    Phase decomposition: each output-parity phase (r, s) is a stride-1 2x2 conv
    over the pad-1 input; all 4 phases are packed into one 3x3-tap valid conv
    producing 4*Cout channels, followed by depth-to-space in the wrapper.
    """
    Cin, Cout, kh, kw = w.shape
    assert kh == 4 and kw == 4
    tap_list = []
    for u in range(3):
        for v in range(3):
            phase_blocks = []
            for r in range(2):
                for s in range(2):
                    dh, dw = u - r, v - s
                    if dh in (0, 1) and dw in (0, 1):
                        phase_blocks.append(w[:, :, 3 + r - 2 * u, 3 + s - 2 * v])
                    else:
                        phase_blocks.append(jnp.zeros((Cin, Cout), w.dtype))
            tap_list.append(jnp.concatenate(phase_blocks, axis=1))  # (Cin, 4*Cout)
    wp = jnp.stack(tap_list, axis=0)  # (9, Cin, 4*Cout)
    return {"w": wp.astype(jnp.bfloat16),
            "b": jnp.tile(b, 4).reshape(1, -1).astype(jnp.float32),
            "a": jnp.tile(alpha, 4).reshape(1, -1).astype(jnp.float32),
            "taps": (3, 3), "pad": 1, "s2d": False, "d2s": True}


# ----------------------------------------------------------------------------
# Plain-JAX glue (NHWC): bilinear resize, softsplat(average), correlation.
# ----------------------------------------------------------------------------
def _src_index(out_size, in_size):
    scale = in_size / out_size
    d = jnp.arange(out_size, dtype=jnp.float32)
    src = jnp.maximum((d + 0.5) * scale - 0.5, 0.0)
    i0 = jnp.minimum(jnp.floor(src).astype(jnp.int32), in_size - 1)
    i1 = jnp.minimum(i0 + 1, in_size - 1)
    frac = src - i0.astype(jnp.float32)
    return i0, i1, frac


def resize_bilinear(x, out_h, out_w):
    # matches F.interpolate(mode='bilinear', align_corners=False), NHWC
    N, H, W, C = x.shape
    if out_h == H and out_w == W:
        return x
    y0, y1, fy = _src_index(out_h, H)
    x0, x1, fx = _src_index(out_w, W)
    r0 = x[:, y0, :, :]
    r1 = x[:, y1, :, :]
    a = r0[:, :, x0, :]
    b = r0[:, :, x1, :]
    c = r1[:, :, x0, :]
    d = r1[:, :, x1, :]
    fx = fx[None, None, :, None]
    fy = fy[None, :, None, None]
    top = a * (1 - fx) + b * fx
    bot = c * (1 - fx) + d * fx
    return top * (1 - fy) + bot * fy


def interp_scale(x, scale):
    N, H, W, C = x.shape
    return resize_bilinear(x, int(math.floor(H * scale)), int(math.floor(W * scale)))


def softsplat_average(inp, flow):
    # forward (splatting) warp, 'average' normalization (NHWC).
    # flow[..., 0] = dx, flow[..., 1] = dy
    # TODO(synk): scatter-add kept in plain JAX (.at[].add); no clean Pallas scatter on TPU.
    N, H, W, C = inp.shape
    z = jnp.concatenate([inp, jnp.ones((N, H, W, 1), inp.dtype)], axis=-1)

    def one(zz, fl):
        gx = jnp.arange(W, dtype=jnp.float32)[None, :] + fl[..., 0]
        gy = jnp.arange(H, dtype=jnp.float32)[:, None] + fl[..., 1]
        x0 = jnp.floor(gx)
        y0 = jnp.floor(gy)
        wx1 = gx - x0
        wy1 = gy - y0
        src = zz.reshape(H * W, C + 1)
        out = jnp.zeros((H * W, C + 1), inp.dtype)
        corners = [(x0, y0, (1 - wx1) * (1 - wy1)),
                   (x0 + 1, y0, wx1 * (1 - wy1)),
                   (x0, y0 + 1, (1 - wx1) * wy1),
                   (x0 + 1, y0 + 1, wx1 * wy1)]
        for xi, yi, wgt in corners:
            xi_i = xi.astype(jnp.int32)
            yi_i = yi.astype(jnp.int32)
            valid = (xi_i >= 0) & (xi_i < W) & (yi_i >= 0) & (yi_i < H)
            idx = (jnp.clip(yi_i, 0, H - 1) * W + jnp.clip(xi_i, 0, W - 1)).reshape(-1)
            wv = jnp.where(valid, wgt, 0.0).reshape(H * W, 1)
            out = out.at[idx, :].add(src * wv)
        return out.reshape(H, W, C + 1)

    outz = jax.vmap(one)(z, flow)
    norm = outz[..., -1:]
    norm = jnp.where(norm == 0.0, 1.0, norm)
    return outz[..., :-1] / norm


def correlation(f0, f1, md=4):
    # PWC-style 9x9 cost volume, channel-mean normalized -> 81 channels (NHWC).
    # TODO(synk): kept in plain JAX; could be fused into one Pallas pass.
    N, H, W, C = f0.shape
    f1p = jnp.pad(f1, ((0, 0), (md, md), (md, md), (0, 0)))
    outs = []
    for dy in range(-md, md + 1):
        for dx in range(-md, md + 1):
            sh = f1p[:, md + dy:md + dy + H, md + dx:md + dx + W, :]
            outs.append(jnp.sum(f0 * sh, axis=-1) / C)
    return jnp.stack(outs, axis=-1)


# ----------------------------------------------------------------------------
# Model pieces (NHWC internally)
# ----------------------------------------------------------------------------
def feat_pyramid(params, img):
    x = img
    feats = []
    for stage in params:
        for pk in stage:
            x = conv_block(x, pk, "leaky")
        feats.append(x)
    return feats


def motion_estimator(params, feat0, feat1, last_feat, last_flow):
    feat0 = softsplat_average(feat0, last_flow[..., 0:2] * 0.25 * 0.5)
    feat1 = softsplat_average(feat1, last_flow[..., 2:4] * 0.25 * 0.5)
    vol = correlation(feat0, feat1)
    vol = jnp.maximum(vol, 0.1 * vol)  # leaky_relu(0.1)
    feat = jnp.concatenate([vol, feat0, feat1, last_feat, last_flow], axis=-1)
    for pk in params[:5]:
        feat = conv_block(feat, pk, "leaky")
    flow = conv_block(feat, params[5], "none")
    return flow, feat


def synth_get_warped(bi_flow, c0, c1, i0=None, i1=None, t=0.5):
    flow_0t = bi_flow[..., 0:2] * t
    flow_1t = bi_flow[..., 2:4] * (1.0 - t)
    wc0 = softsplat_average(c0, flow_0t)
    wc1 = softsplat_average(c1, flow_1t)
    if i0 is None and i1 is None:
        return wc0, wc1
    wi0 = softsplat_average(i0, flow_0t)
    wi1 = softsplat_average(i1, flow_1t)
    return wi0, wi1, wc0, wc1, jnp.concatenate([flow_0t, flow_1t], axis=-1)


def synthesis(params, last_i, i0, i1, c0_pyr, c1_pyr, bi_flow_pyr, t=0.5):
    wi0, wi1, wc0, wc1, flow_0t_1t = synth_get_warped(
        bi_flow_pyr[0], c0_pyr[0], c1_pyr[0], i0, i1, t)
    x = jnp.concatenate([last_i, wi0, wi1, i0, i1, flow_0t_1t], axis=-1)  # 19 ch
    for pk in params["encoder_conv"]:
        x = conv_block(x, pk, "prelu")
    s0 = x
    x = jnp.concatenate([s0, wc0, wc1], axis=-1)
    for pk in params["encoder_down1"]:
        x = conv_block(x, pk, "prelu")
    s1 = x
    wc0, wc1 = synth_get_warped(bi_flow_pyr[1], c0_pyr[1], c1_pyr[1], t=t)
    x = jnp.concatenate([s1, wc0, wc1], axis=-1)
    for pk in params["encoder_down2"]:
        x = conv_block(x, pk, "prelu")
    s2 = x
    wc0, wc1 = synth_get_warped(bi_flow_pyr[2], c0_pyr[2], c1_pyr[2], t=t)
    x = jnp.concatenate([s2, wc0, wc1], axis=-1)
    for pk in params["decoder_up1"]:
        x = conv_block(x, pk, "prelu")
    x = jnp.concatenate([x, s1], axis=-1)
    for pk in params["decoder_up2"]:
        x = conv_block(x, pk, "prelu")
    x = jnp.concatenate([x, s0], axis=-1)
    for pk in params["decoder_conv"]:
        x = conv_block(x, pk, "prelu")
    refine = conv_block(x, params["pred"], "none")
    refine_res = jax.nn.sigmoid(refine[..., 0:3]) * 2.0 - 1.0
    m0 = jax.nn.sigmoid(refine[..., 3:4])
    m1 = jax.nn.sigmoid(refine[..., 4:5])
    merged = wi0 * m0 * (1.0 - t) + wi1 * m1 * t
    merged = merged / (m0 * (1.0 - t) + m1 * t)
    interp = jnp.clip(merged + refine_res, 0.0, 1.0)
    extra = {"refine_res": refine_res, "warped_img0": wi0,
             "warped_img1": wi1, "merged_img": merged}
    return interp, extra


def forward_one_lvl(params, img0, img1, last_feat, last_flow,
                    last_interp=None, t=0.5, skip_me=False):
    f0 = feat_pyramid(params["feat_pyramid"], img0)
    f1 = feat_pyramid(params["feat_pyramid"], img1)
    if not skip_me:
        flow, feat = motion_estimator(params["motion"], f0[-1], f1[-1],
                                      last_feat, last_flow)
    else:
        flow, feat = last_flow, last_feat
    ori_flow = interp_scale(flow, 4.0)
    bi_flow_pyr = [ori_flow]
    tmp = ori_flow
    for _ in range(2):
        tmp = interp_scale(tmp, 0.5) * 0.5
        bi_flow_pyr.append(tmp)
    if last_interp is None:
        flow_0t = ori_flow[..., 0:2] * t
        flow_1t = ori_flow[..., 2:4] * (1.0 - t)
        wi0 = softsplat_average(img0, flow_0t)
        wi1 = softsplat_average(img1, flow_1t)
        last_interp = wi0 * (1.0 - t) + wi1 * t
    interp_img, extra = synthesis(params["synth"], last_interp, img0, img1,
                                  f0, f1, bi_flow_pyr, t)
    return flow, feat, interp_img, extra


def upr_forward(params, img0, img1, time_period, pyr_level=3):
    # TODO(synk): skipped-level branches (nr_lvl_skipped > 0) not implemented; default is 0.
    N, _, H, W = img0.shape
    im0_full = jnp.transpose(img0, (0, 2, 3, 1))  # NCHW -> NHWC at the boundary
    im1_full = jnp.transpose(img1, (0, 2, 3, 1))
    bi_flows, interp_imgs = [], []
    flow = feat = interp_img = None
    for level in list(range(pyr_level))[::-1]:
        if level != 0:
            sf = 1.0 / (2 ** level)
            im0 = interp_scale(im0_full, sf)
            im1 = interp_scale(im1_full, sf)
        else:
            im0, im1 = im0_full, im1_full
        if level == pyr_level - 1:
            hq = H // 2 ** (level + 2)
            wq = W // 2 ** (level + 2)
            last_flow = jnp.zeros((N, hq, wq, 4), jnp.float32)
            last_feat = jnp.zeros((N, hq, wq, 96), jnp.float32)
            last_interp = None
        else:
            last_flow = interp_scale(flow, 2.0) * 2.0
            last_feat = interp_scale(feat, 2.0) * 2.0
            last_interp = interp_scale(interp_img, 2.0)
        flow, feat, interp_img, _ = forward_one_lvl(
            params, im0, im1, last_feat, last_flow, last_interp,
            time_period, skip_me=False)
        bi_flows.append(interp_scale(flow, 4.0))
        interp_imgs.append(interp_img)
    bi_flow = interp_scale(flow, 4.0)
    to_nchw = lambda v: jnp.transpose(v, (0, 3, 1, 2))
    return (to_nchw(interp_img), to_nchw(bi_flow),
            {"interp_imgs": [to_nchw(v) for v in interp_imgs],
             "bi_flows": [to_nchw(v) for v in bi_flows]})


# ----------------------------------------------------------------------------
# Deterministic synthetic parameters (packed once)
# ----------------------------------------------------------------------------
def make_params(key):
    kit = iter(jax.random.split(key, 64))

    def rnd(shape, fan_in):
        return jax.random.normal(next(kit), shape, jnp.float32) * (0.5 / math.sqrt(fan_in))

    def conv(cout, cin, k, stride=1, pad=1, alpha=None):
        w = rnd((cout, cin, k, k), cin * k * k)
        b = jnp.zeros((cout,), jnp.float32)
        return pack_conv(w, b, alpha=alpha, stride=stride, pad=pad)

    def convT(cin, cout, k, alpha):
        w = rnd((cin, cout, k, k), cin * k * k)
        b = jnp.zeros((cout,), jnp.float32)
        return pack_convT(w, b, alpha)

    def prelu(n):
        return jnp.full((n,), 0.25, jnp.float32)

    fp = [
        [conv(24, 3, 3), conv(24, 24, 3), conv(24, 24, 3), conv(24, 24, 3)],
        [conv(48, 24, 3, stride=2), conv(48, 48, 3), conv(48, 48, 3), conv(48, 48, 3)],
        [conv(96, 48, 3, stride=2), conv(96, 96, 3), conv(96, 96, 3), conv(96, 96, 3)],
    ]
    motion = [
        conv(240, 373, 1, pad=0), conv(192, 240, 3), conv(168, 192, 3),
        conv(144, 168, 3), conv(96, 144, 3), conv(4, 96, 3),
    ]
    synth = {
        "encoder_conv": [conv(48, 19, 3, alpha=prelu(48)),
                         conv(48, 48, 3, alpha=prelu(48))],
        "encoder_down1": [conv(96, 96, 3, stride=2, alpha=prelu(96)),
                          conv(96, 96, 3, alpha=prelu(96)),
                          conv(96, 96, 3, alpha=prelu(96))],
        "encoder_down2": [conv(192, 192, 3, stride=2, alpha=prelu(192)),
                          conv(192, 192, 3, alpha=prelu(192)),
                          conv(192, 192, 3, alpha=prelu(192))],
        "decoder_up1": [convT(384, 96, 4, prelu(96)),
                        conv(96, 96, 3, alpha=prelu(96))],
        "decoder_up2": [convT(192, 48, 4, prelu(48)),
                        conv(48, 48, 3, alpha=prelu(48))],
        "decoder_conv": [conv(48, 96, 3, alpha=prelu(48)),
                         conv(48, 48, 3, alpha=prelu(48))],
        "pred": conv(5, 48, 3),
    }
    return {"feat_pyramid": fp, "motion": motion, "synth": synth}


if __name__ == "__main__":
    key = jax.random.PRNGKey(0)
    kp, k0, k1 = jax.random.split(key, 3)
    params = make_params(kp)
    # H, W must be divisible by 16 (pyr_level=3 coarsest flow is H/16 x W/16)
    img0 = jax.random.uniform(k0, (2, 3, 16, 16), jnp.float32)
    img1 = jax.random.uniform(k1, (2, 3, 16, 16), jnp.float32)

    interp_img, bi_flow, extra = upr_forward(params, img0, img1, time_period=0.5)
    jax.block_until_ready(interp_img)
    jax.block_until_ready(bi_flow)
    assert interp_img.shape == (2, 3, 16, 16)
    assert bi_flow.shape == (2, 4, 16, 16)
    assert bool(jnp.all(jnp.isfinite(interp_img)))
    print("KERNEL_OK")
</pallas_src>

<mosaic_0001>
module attributes {stable_mosaic.version = 11 : i64} {
  func.func @_conv_kernel(%arg0: i32, %arg1: memref<2x6x6x3xf32, #tpu.memory_space<vmem>>, %arg2: memref<9x3x24xbf16, #tpu.memory_space<vmem>>, %arg3: memref<1x24xf32, #tpu.memory_space<vmem>>, %arg4: memref<32x24xf32, #tpu.memory_space<vmem>>) attributes {dimension_semantics = [#tpu.dimension_semantics<arbitrary>], iteration_bounds = array<i64: 1>, scalar_prefetch = 0 : i64, scratch_operands = 0 : i64, tpu.core_type = #tpu.core_type<tc>, window_params = [{pipeline_mode = #tpu.pipeline_mode<synchronous>, transform_indices = @transform_0, window_bounds = array<i64: 2, 6, 6, 3>}, {pipeline_mode = #tpu.pipeline_mode<synchronous>, transform_indices = @transform_1, window_bounds = array<i64: 9, 3, 24>}, {pipeline_mode = #tpu.pipeline_mode<synchronous>, transform_indices = @transform_2, window_bounds = array<i64: 1, 24>}, {pipeline_mode = #tpu.pipeline_mode<synchronous>, transform_indices = @transform_3, window_bounds = array<i64: 32, 24>}]} {
    %cst = arith.constant 0.000000e+00 : f32
    %0 = vector.broadcast %cst : f32 to vector<32x24xf32>
    %c0 = arith.constant 0 : index
    %c0_0 = arith.constant 0 : index
    %c0_1 = arith.constant 0 : index
    %c0_2 = arith.constant 0 : index
    %1 = vector.load %arg1[%c0, %c0_0, %c0_1, %c0_2] : memref<2x6x6x3xf32, #tpu.memory_space<vmem>>, vector<2x4x4x3xf32>
    %2 = vector.shape_cast %1 : vector<2x4x4x3xf32> to vector<32x3xf32>
    %3 = arith.truncf %2 : vector<32x3xf32> to vector<32x3xbf16>
    %c0_3 = arith.constant 0 : index
    %c0_4 = arith.constant 0 : index
    %c0_5 = arith.constant 0 : index
    %4 = vector.load %arg2[%c0_3, %c0_4, %c0_5] : memref<9x3x24xbf16, #tpu.memory_space<vmem>>, vector<1x3x24xbf16>
    %5 = vector.shape_cast %4 : vector<1x3x24xbf16> to vector<3x24xbf16>
    %cst_6 = arith.constant dense<0.000000e+00> : vector<32x24xf32>
    %6 = tpu.matmul %3, %5, %cst_6 {dimension_numbers = #tpu.dot_dimension_numbers<[1], [0], [0], [1], [0, 0, 1, 1], [], []>} : vector<32x3xbf16>, vector<3x24xbf16>, vector<32x24xf32> -> vector<32x24xf32>
    %7 = arith.addf %0, %6 : vector<32x24xf32>
    %c0_7 = arith.constant 0 : index
    %c0_8 = arith.constant 0 : index
    %c1 = arith.constant 1 : index
    %c0_9 = arith.constant 0 : index
    %8 = vector.load %arg1[%c0_7, %c0_8, %c1, %c0_9] : memref<2x6x6x3xf32, #tpu.memory_space<vmem>>, vector<2x4x4x3xf32>
    %9 = vector.shape_cast %8 : vector<2x4x4x3xf32> to vector<32x3xf32>
    %10 = arith.truncf %9 : vector<32x3xf32> to vector<32x3xbf16>
    %c1_10 = arith.constant 1 : index
    %c0_11 = arith.constant 0 : index
    %c0_12 = arith.constant 0 : index
    %11 = vector.load %arg2[%c1_10, %c0_11, %c0_12] : memref<9x3x24xbf16, #tpu.memory_space<vmem>>, vector<1x3x24xbf16>
    %12 = vector.shape_cast %11 : vector<1x3x24xbf16> to vector<3x24xbf16>
    %cst_13 = arith.constant dense<0.000000e+00> : vector<32x24xf32>
    %13 = tpu.matmul %10, %12, %cst_13 {dimension_numbers = #tpu.dot_dimension_numbers<[1], [0], [0], [1], [0, 0, 1, 1], [], []>} : vector<32x3xbf16>, vector<3x24xbf16>, vector<32x24xf32> -> vector<32x24xf32>
    %14 = arith.addf %7, %13 : vector<32x24xf32>
    %c0_14 = arith.constant 0 : index
    %c0_15 = arith.constant 0 : index
    %c2 = arith.constant 2 : index
    %c0_16 = arith.constant 0 : index
    %15 = vector.load %arg1[%c0_14, %c0_15, %c2, %c0_16] : memref<2x6x6x3xf32, #tpu.memory_space<vmem>>, vector<2x4x4x3xf32>
    %16 = vector.shape_cast %15 : vector<2x4x4x3xf32> to vector<32x3xf32>
    %17 = arith.truncf %16 : vector<32x3xf32> to vector<32x3xbf16>
    %c2_17 = arith.constant 2 : index
    %c0_18 = arith.constant 0 : index
    %c0_19 = arith.constant 0 : index
    %18 = vector.load %arg2[%c2_17, %c0_18, %c0_19] : memref<9x3x24xbf16, #tpu.memory_space<vmem>>, vector<1x3x24xbf16>
    %19 = vector.shape_cast %18 : vector<1x3x24xbf16> to vector<3x24xbf16>
    %cst_20 = arith.constant dense<0.000000e+00> : vector<32x24xf32>
    %20 = tpu.matmul %17, %19, %cst_20 {dimension_numbers = #tpu.dot_dimension_numbers<[1], [0], [0], [1], [0, 0, 1, 1], [], []>} : vector<32x3xbf16>, vector<3x24xbf16>, vector<32x24xf32> -> vector<32x24xf32>
    %21 = arith.addf %14, %20 : vector<32x24xf32>
    %c0_21 = arith.constant 0 : index
    %c1_22 = arith.constant 1 : index
    %c0_23 = arith.constant 0 : index
    %c0_24 = arith.constant 0 : index
    %22 = vector.load %arg1[%c0_21, %c1_22, %c0_23, %c0_24] : memref<2x6x6x3xf32, #tpu.memory_space<vmem>>, vector<2x4x4x3xf32>
    %23 = vector.shape_cast %22 : vector<2x4x4x3xf32> to vector<32x3xf32>
    %24 = arith.truncf %23 : vector<32x3xf32> to vector<32x3xbf16>
    %c3 = arith.constant 3 : index
    %c0_25 = arith.constant 0 : index
    %c0_26 = arith.constant 0 : index
    %25 = vector.load %arg2[%c3, %c0_25, %c0_26] : memref<9x3x24xbf16, #tpu.memory_space<vmem>>, vector<1x3x24xbf16>
    %26 = vector.shape_cast %25 : vector<1x3x24xbf16> to vector<3x24xbf16>
    %cst_27 = arith.constant dense<0.000000e+00> : vector<32x24xf32>
    %27 = tpu.matmul %24, %26, %cst_27 {dimension_numbers = #tpu.dot_dimension_numbers<[1], [0], [0], [1], [0, 0, 1, 1], [], []>} : vector<32x3xbf16>, vector<3x24xbf16>, vector<32x24xf32> -> vector<32x24xf32>
    %28 = arith.addf %21, %27 : vector<32x24xf32>
    %c0_28 = arith.constant 0 : index
    %c1_29 = arith.constant 1 : index
    %c1_30 = arith.constant 1 : index
    %c0_31 = arith.constant 0 : index
    %29 = vector.load %arg1[%c0_28, %c1_29, %c1_30, %c0_31] : memref<2x6x6x3xf32, #tpu.memory_space<vmem>>, vector<2x4x4x3xf32>
    %30 = vector.shape_cast %29 : vector<2x4x4x3xf32> to vector<32x3xf32>
    %31 = arith.truncf %30 : vector<32x3xf32> to vector<32x3xbf16>
    %c4 = arith.constant 4 : index
    %c0_32 = arith.constant 0 : index
    %c0_33 = arith.constant 0 : index
    %32 = vector.load %arg2[%c4, %c0_32, %c0_33] : memref<9x3x24xbf16, #tpu.memory_space<vmem>>, vector<1x3x24xbf16>
    %33 = vector.shape_cast %32 : vector<1x3x24xbf16> to vector<3x24xbf16>
    %cst_34 = arith.constant dense<0.000000e+00> : vector<32x24xf32>
    %34 = tpu.matmul %31, %33, %cst_34 {dimension_numbers = #tpu.dot_dimension_numbers<[1], [0], [0], [1], [0, 0, 1, 1], [], []>} : vector<32x3xbf16>, vector<3x24xbf16>, vector<32x24xf32> -> vector<32x24xf32>
    %35 = arith.addf %28, %34 : vector<32x24xf32>
    %c0_35 = arith.constant 0 : index
    %c1_36 = arith.constant 1 : index
    %c2_37 = arith.constant 2 : index
    %c0_38 = arith.constant 0 : index
    %36 = vector.load %arg1[%c0_35, %c1_36, %c2_37, %c0_38] : memref<2x6x6x3xf32, #tpu.memory_space<vmem>>, vector<2x4x4x3xf32>
    %37 = vector.shape_cast %36 : vector<2x4x4x3xf32> to vector<32x3xf32>
    %38 = arith.truncf %37 : vector<32x3xf32> to vector<32x3xbf16>
    %c5 = arith.constant 5 : index
    %c0_39 = arith.constant 0 : index
    %c0_40 = arith.constant 0 : index
    %39 = vector.load %arg2[%c5, %c0_39, %c0_40] : memref<9x3x24xbf16, #tpu.memory_space<vmem>>, vector<1x3x24xbf16>
    %40 = vector.shape_cast %39 : vector<1x3x24xbf16> to vector<3x24xbf16>
    %cst_41 = arith.constant dense<0.000000e+00> : vector<32x24xf32>
    %41 = tpu.matmul %38, %40, %cst_41 {dimension_numbers = #tpu.dot_dimension_numbers<[1], [0], [0], [1], [0, 0, 1, 1], [], []>} : vector<32x3xbf16>, vector<3x24xbf16>, vector<32x24xf32> -> vector<32x24xf32>
    %42 = arith.addf %35, %41 : vector<32x24xf32>
    %c0_42 = arith.constant 0 : index
    %c2_43 = arith.constant 2 : index
    %c0_44 = arith.constant 0 : index
    %c0_45 = arith.constant 0 : index
    %43 = vector.load %arg1[%c0_42, %c2_43, %c0_44, %c0_45] : memref<2x6x6x3xf32, #tpu.memory_space<vmem>>, vector<2x4x4x3xf32>
    %44 = vector.shape_cast %43 : vector<2x4x4x3xf32> to vector<32x3xf32>
    %45 = arith.truncf %44 : vector<32x3xf32> to vector<32x3xbf16>
    %c6 = arith.constant 6 : index
    %c0_46 = arith.constant 0 : index
    %c0_47 = arith.constant 0 : index
    %46 = vector.load %arg2[%c6, %c0_46, %c0_47] : memref<9x3x24xbf16, #tpu.memory_space<vmem>>, vector<1x3x24xbf16>
    %47 = vector.shape_cast %46 : vector<1x3x24xbf16> to vector<3x24xbf16>
    %cst_48 = arith.constant dense<0.000000e+00> : vector<32x24xf32>
    %48 = tpu.matmul %45, %47, %cst_48 {dimension_numbers = #tpu.dot_dimension_numbers<[1], [0], [0], [1], [0, 0, 1, 1], [], []>} : vector<32x3xbf16>, vector<3x24xbf16>, vector<32x24xf32> -> vector<32x24xf32>
    %49 = arith.addf %42, %48 : vector<32x24xf32>
    %c0_49 = arith.constant 0 : index
    %c2_50 = arith.constant 2 : index
    %c1_51 = arith.constant 1 : index
    %c0_52 = arith.constant 0 : index
    %50 = vector.load %arg1[%c0_49, %c2_50, %c1_51, %c0_52] : memref<2x6x6x3xf32, #tpu.memory_space<vmem>>, vector<2x4x4x3xf32>
    %51 = vector.shape_cast %50 : vector<2x4x4x3xf32> to vector<32x3xf32>
    %52 = arith.truncf %51 : vector<32x3xf32> to vector<32x3xbf16>
    %c7 = arith.constant 7 : index
    %c0_53 = arith.constant 0 : index
    %c0_54 = arith.constant 0 : index
    %53 = vector.load %arg2[%c7, %c0_53, %c0_54] : memref<9x3x24xbf16, #tpu.memory_space<vmem>>, vector<1x3x24xbf16>
    %54 = vector.shape_cast %53 : vector<1x3x24xbf16> to vector<3x24xbf16>
    %cst_55 = arith.constant dense<0.000000e+00> : vector<32x24xf32>
    %55 = tpu.matmul %52, %54, %cst_55 {dimension_numbers = #tpu.dot_dimension_numbers<[1], [0], [0], [1], [0, 0, 1, 1], [], []>} : vector<32x3xbf16>, vector<3x24xbf16>, vector<32x24xf32> -> vector<32x24xf32>
    %56 = arith.addf %49, %55 : vector<32x24xf32>
    %c0_56 = arith.constant 0 : index
    %c2_57 = arith.constant 2 : index
    %c2_58 = arith.constant 2 : index
    %c0_59 = arith.constant 0 : index
    %57 = vector.load %arg1[%c0_56, %c2_57, %c2_58, %c0_59] : memref<2x6x6x3xf32, #tpu.memory_space<vmem>>, vector<2x4x4x3xf32>
    %58 = vector.shape_cast %57 : vector<2x4x4x3xf32> to vector<32x3xf32>
    %59 = arith.truncf %58 : vector<32x3xf32> to vector<32x3xbf16>
    %c8 = arith.constant 8 : index
    %c0_60 = arith.constant 0 : index
    %c0_61 = arith.constant 0 : index
    %60 = vector.load %arg2[%c8, %c0_60, %c0_61] : memref<9x3x24xbf16, #tpu.memory_space<vmem>>, vector<1x3x24xbf16>
    %61 = vector.shape_cast %60 : vector<1x3x24xbf16> to vector<3x24xbf16>
    %cst_62 = arith.constant dense<0.000000e+00> : vector<32x24xf32>
    %62 = tpu.matmul %59, %61, %cst_62 {dimension_numbers = #tpu.dot_dimension_numbers<[1], [0], [0], [1], [0, 0, 1, 1], [], []>} : vector<32x3xbf16>, vector<3x24xbf16>, vector<32x24xf32> -> vector<32x24xf32>
    %63 = arith.addf %56, %62 : vector<32x24xf32>
    %c0_63 = arith.constant 0 : index
    %c0_64 = arith.constant 0 : index
    %64 = vector.load %arg3[%c0_63, %c0_64] : memref<1x24xf32, #tpu.memory_space<vmem>>, vector<1x24xf32>
    %65 = vector.broadcast %64 : vector<1x24xf32> to vector<32x24xf32>
    %66 = arith.addf %63, %65 : vector<32x24xf32>
    %cst_65 = arith.constant 1.000000e-01 : f32
    %67 = vector.broadcast %cst_65 : f32 to vector<32x24xf32>
    %68 = arith.mulf %67, %66 : vector<32x24xf32>
    %69 = arith.maximumf %66, %68 : vector<32x24xf32>
    %c0_66 = arith.constant 0 : index
    %c0_67 = arith.constant 0 : index
    %70 = vector.load %arg4[%c0_66, %c0_67] : memref<32x24xf32, #tpu.memory_space<vmem>>, vector<32x24xf32>
    tpu.vector_store %arg4[%c0_66, %c0_67], %69 {strides = array<i32>} : memref<32x24xf32, #tpu.memory_space<vmem>>, vector<32x24xf32>,
    return
  }
  func.func @transform_0(%arg0: i32) -> (i32, i32, i32, i32) {
    %c0_i32 = arith.constant 0 : i32
    %c0_i32_0 = arith.constant 0 : i32
    %c0_i32_1 = arith.constant 0 : i32
    %c0_i32_2 = arith.constant 0 : i32
    %c0_i32_3 = arith.constant 0 : i32
    return %c0_i32, %c0_i32_0, %c0_i32_1, %c0_i32_2 : i32, i32, i32, i32
  }
  func.func @transform_1(%arg0: i32) -> (i32, i32, i32) {
    %c0_i32 = arith.constant 0 : i32
    %c0_i32_0 = arith.constant 0 : i32
    %c0_i32_1 = arith.constant 0 : i32
    %c0_i32_2 = arith.constant 0 : i32
    return %c0_i32, %c0_i32_0, %c0_i32_1 : i32, i32, i32
  }
  func.func @transform_2(%arg0: i32) -> (i32, i32) {
    %c0_i32 = arith.constant 0 : i32
    %c0_i32_0 = arith.constant 0 : i32
    %c0_i32_1 = arith.constant 0 : i32
    return %c0_i32, %c0_i32_0 : i32, i32
  }
  func.func @transform_3(%arg0: i32) -> (i32, i32) {
    %c0_i32 = arith.constant 0 : i32
    %c0_i32_0 = arith.constant 0 : i32
    %c0_i32_1 = arith.constant 0 : i32
    return %c0_i32, %c0_i32_0 : i32, i32
  }
}

</mosaic_0001>

<bundles_post_ra>
// kernel: _conv_apply.1
= control target key start
LH: loop header
LB: loop body
LE: loop exit
PB: predicated region body
PF: predicated region fallthrough
CT: control target
= control target key end

     0   :  { %vm78_vm0 = vcmask 1040384   ;;  %vm79_vm1 = vcmask 1041408   ;;  %v1116_v1 = vmov 65535   ;;  %vm71_vm2 = vcmask 23552   ;;  %s1319_s0 = inlined_call_operand.vmem [shape: f32[2,6,6,3], index: 0, kind: input, shape index: {}]   ;;  %s1320_s1 = inlined_call_operand.vmem [shape: bf16[9,3,24], index: 1, kind: input, shape index: {}]   ;;  %s1321_s2 = inlined_call_operand.vmem [shape: f32[1,24], index: 2, kind: input, shape index: {}]   ;;  %s1322_s3 = inlined_call_operand.hbm [shape: f32[32,24], index: 3, kind: output, shape index: {}]  }
   0x1   :  { %v864_v0 = vld [vmem:[%s1320_s1 + $0x2] sm:$0x3]  ;;  %v80_v2 = vsel %vm78_vm0, 4294967295, %v1116_v1  ;;  %v891_v3 = vld [vmem:[%s1320_s1 + $0x8] sm:$0x3] }
   0x2   :  { %v1146_v4 = vsel %vm79_vm1, %v80_v2, 0  ;;  %v1056_v7 = vld [vmem:[%s1319_s0 + $0x1] ss:$8 sps:$4 sm:$0xff]   ;;  %v1057_v8 = vld [vmem:[%s1319_s0 + $0x11] ss:$8 sps:$4 sm:$0xff]  }
   0x3   :  { %v83_v5 = vand.u32 %v864_v0, %v1146_v4  ;;  %v408_v6 = vand.u32 %v891_v3, %v1146_v4  ;;  %v67_v9 = vpack.c.bf16 %v1057_v8, %v1056_v7  ;;  %v1058_v10 = vld [vmem:[%s1319_s0 + $0x9] ss:$8 sps:$4 sm:$0xff]   ;;  %v1059_v11 = vld [vmem:[%s1319_s0 + $0x19] ss:$8 sps:$4 sm:$0xff]   ;;  %v924_v49 = vld [vmem:[%s1320_s1 + $0xe] sm:$0x3] }
   0x4   :  { %v397_v12 = vpack.c.bf16 %v1059_v11, %v1058_v10  ;;  %v1060_v13 = vld [vmem:[%s1319_s0 + $0x31] ss:$8 sps:$4 sm:$0xff]   ;;  %v1061_v14 = vld [vmem:[%s1319_s0 + $0x41] ss:$8 sps:$4 sm:$0xff]   ;;  %v880_v50 = vld [vmem:[%s1320_s1 + $0x6] sm:$0x3]  ;;  %v679_v51 = vand.u32 %v924_v49, %v1146_v4 }
   0x5   :  { %966 = vmatprep.subr.bf16.mxu1 %v83_v5  ;;  %990 = vmatprep.subr.bf16.mxu0 %v408_v6  ;;  %v68_v15 = vpack.c.bf16 %v1061_v14, %v1060_v13  ;;  %v1062_v16 = vld [vmem:[%s1319_s0 + $0x39] ss:$8 sps:$4 sm:$0xff]   ;;  %v1063_v17 = vld [vmem:[%s1319_s0 + $0x49] ss:$8 sps:$4 sm:$0xff]   ;;  %v318_v52 = vand.u32 %v880_v50, %v1146_v4 }
   0x6   :  { %967 = vmatpush3.bf16.msra.mxu1 %v83_v5  ;;  %991 = vmatpush3.bf16.msra.mxu0 %v408_v6  ;;  %v902_v18 = vld [vmem:[%s1320_s1 + $0xa] sm:$0x3]  ;;  %v42_v19 = vld [vmem:[%s1320_s1] sm:$0x3]  ;;  %v398_v20 = vpack.c.bf16 %v1063_v17, %v1062_v16  ;;  %v1065_v24 = vld [vmem:[%s1319_s0 + $0x10] ss:$8 sps:$4 sm:$0xff]  }
   0x7   :  { %968 = vmatprep.mubr.msk.bf16.mxu1 %vm71_vm2, %v67_v9  ;;  %992 = vmatprep.mubr.msk.bf16.mxu0 %vm71_vm2, %v397_v12  ;;  %v498_v21 = vand.u32 %v902_v18, %v1146_v4  ;;  %v141_v22 = vand.u32 %v1146_v4, %v42_v19  ;;  %v1064_v23 = vld [vmem:[%s1319_s0] ss:$8 sps:$4 sm:$0xff]   ;;  %v1068_v29 = vld [vmem:[%s1319_s0 + $0x30] ss:$8 sps:$4 sm:$0xff]   ;;  %v913_v33 = vld [vmem:[%s1320_s1 + $0xc] sm:$0x3] }
   0x8   :  { %v40_v25 = vpack.c.bf16 %v1065_v24, %v1064_v23  ;;  %v1066_v26 = vld [vmem:[%s1319_s0 + $0xa] ss:$8 sps:$4 sm:$0xff]   ;;  %v1067_v27 = vld [vmem:[%s1319_s0 + $0x1a] ss:$8 sps:$4 sm:$0xff]   ;;  %v589_v35 = vand.u32 %v913_v33, %v1146_v4  ;;  %v935_v61 = vld [vmem:[%s1320_s1 + $0x10] sm:$0x3] }
   0x9   :  { %969 = vmatmul.mubr.msk.bf16.vlgmr.msra.gmra.mrb[0].mxu1 %vm71_vm2, %v68_v15  ;;  %993 = vmatmul.mubr.msk.bf16.vlgmr.msra.gmra.mrb[0].mxu0 %vm71_vm2, %v398_v20  ;;  %v487_v28 = vpack.c.bf16 %v1067_v27, %v1066_v26  ;;  %v1069_v30 = vld [vmem:[%s1319_s0 + $0x40] ss:$8 sps:$4 sm:$0xff]   ;;  %v869_v36 = vld [vmem:[%s1320_s1 + $0x4] sm:$0x3]  ;;  %v1073_v40 = vld [vmem:[%s1319_s0 + $0x12] ss:$8 sps:$4 sm:$0xff]   ;;  %v769_v62 = vand.u32 %v935_v61, %v1146_v4 }
   0xa   :  { %996 = vmatprep.subr.bf16.mxu0 %v498_v21  ;;  %972 = vmatprep.subr.bf16.mxu1 %v141_v22  ;;  %v1070_v31 = vld [vmem:[%s1319_s0 + $0x3a] ss:$8 sps:$4 sm:$0xff]   ;;  %v1071_v32 = vld [vmem:[%s1319_s0 + $0x4a] ss:$8 sps:$4 sm:$0xff]   ;;  %v41_v34 = vpack.c.bf16 %v1069_v30, %v1068_v29  ;;  %v227_v37 = vand.u32 %v869_v36, %v1146_v4 }
   0xb   :  { %997 = vmatpush3.bf16.msra.mxu0 %v498_v21  ;;  %973 = vmatpush3.bf16.msra.mxu1 %v141_v22  ;;  %v1072_v38 = vld [vmem:[%s1319_s0 + $0x2] ss:$8 sps:$4 sm:$0xff]   ;;  %v488_v39 = vpack.c.bf16 %v1071_v32, %v1070_v31  ;;  %v1074_v41 = vld [vmem:[%s1319_s0 + $0x10] ss:$8 sps:$4 sm:$0xff]  }
   0xc   :  { %974 = vmatprep.mubr.msk.bf16.mxu1 %vm71_vm2, %v40_v25  ;;  %998 = vmatprep.mubr.msk.bf16.mxu0 %vm71_vm2, %v487_v28  ;;  %v216_v42 = vpack.c.bf16 %v1073_v40, %v1072_v38  ;;  %v1075_v43 = vld [vmem:[%s1319_s0 + $0x20] ss:$8 sps:$4 sm:$0xff]   ;;  %v1076_v45 = vld [vmem:[%s1319_s0 + $0x32] ss:$8 sps:$4 sm:$0xff]  }
   0xd   :  { %1002 = vmatprep.subr.bf16.mxu0 %v589_v35  ;;  %978 = vmatprep.subr.bf16.mxu1 %v227_v37  ;;  %v578_v44 = vpack.c.bf16 %v1075_v43, %v1074_v41  ;;  %v1077_v46 = vld [vmem:[%s1319_s0 + $0x42] ss:$8 sps:$4 sm:$0xff]   ;;  %v1079_v48 = vld [vmem:[%s1319_s0 + $0x50] ss:$8 sps:$4 sm:$0xff]  }
   0xe   :  { %v1078_v47 = vld [vmem:[%s1319_s0 + $0x40] ss:$8 sps:$4 sm:$0xff]   ;;  %v217_v55 = vpack.c.bf16 %v1077_v46, %v1076_v45  ;;  %v1082_v56 = vld [vmem:[%s1319_s0 + $0x11] ss:$8 sps:$4 sm:$0xff]  }
   0xf   :  { %v1080_v53 = vld [vmem:[%s1319_s0 + $0x8] ss:$8 sps:$4 sm:$0xff]   ;;  %v1081_v54 = vld [vmem:[%s1319_s0 + $0x18] ss:$8 sps:$4 sm:$0xff]   ;;  %v579_v59 = vpack.c.bf16 %v1079_v48, %v1078_v47 }
  0x10   :  { %v1083_v57 = vld [vmem:[%s1319_s0 + $0x21] ss:$8 sps:$4 sm:$0xff]   ;;  %v307_v58 = vpack.c.bf16 %v1081_v54, %v1080_v53 }
  0x11   :  { %v668_v60 = vpack.c.bf16 %v1083_v57, %v1082_v56  ;;  %v1084_v63 = vld [vmem:[%s1319_s0 + $0x38] ss:$8 sps:$4 sm:$0xff]   ;;  %v1085_v0 = vld [vmem:[%s1319_s0 + $0x48] ss:$8 sps:$4 sm:$0xff]  }
  0x15   :  { %975 = vmatmul.mubr.msk.bf16.vlgmr.msra.gmra.mrb[0].mxu1 %vm71_vm2, %v41_v34  ;;  %999 = vmatmul.mubr.msk.bf16.vlgmr.msra.gmra.mrb[0].mxu0 %vm71_vm2, %v488_v39 }
  0x16   :  { %979 = vmatpush3.bf16.msra.mxu1 %v227_v37  ;;  %980 = vmatprep.mubr.msk.bf16.mxu1 %vm71_vm2, %v216_v42 }
  0x17   :  { %1003 = vmatpush3.bf16.msra.mxu0 %v589_v35  ;;  %1004 = vmatprep.mubr.msk.bf16.mxu0 %vm71_vm2, %v578_v44 }
  0x18   :  { %1008 = vmatprep.subr.bf16.mxu0 %v679_v51  ;;  %984 = vmatprep.subr.bf16.mxu1 %v318_v52 }
  0x21   :  { %981 = vmatmul.mubr.msk.bf16.vlgmr.msra.gmra.mrb[0].mxu1 %vm71_vm2, %v217_v55  ;;  %1005 = vmatmul.mubr.msk.bf16.vlgmr.msra.gmra.mrb[0].mxu0 %vm71_vm2, %v579_v59 }
  0x22   :  { %985 = vmatpush3.bf16.msra.mxu1 %v318_v52  ;;  %986 = vmatprep.mubr.msk.bf16.mxu1 %vm71_vm2, %v307_v58 }
  0x23   :  { %1009 = vmatpush3.bf16.msra.mxu0 %v679_v51  ;;  %1010 = vmatprep.mubr.msk.bf16.mxu0 %vm71_vm2, %v668_v60 }
  0x24   :  { %1014 = vmatprep.subr.bf16.mxu0 %v769_v62 }
  0x25   :  { %8 = vsyncpa [#allocation3], 0  ;;  %v1086_v1 = vld [vmem:[%s1319_s0 + $0x41] ss:$8 sps:$4 sm:$0xff]   ;;  %v1087_v2 = vld [vmem:[%s1319_s0 + $0x51] ss:$8 sps:$4 sm:$0xff]   ;;  %v308_v5 = vpack.c.bf16 %v1085_v0, %v1084_v63 }
  0x26   :  { %v1088_v3 = vld [vmem:[%s1319_s0 + $0x12] ss:$8 sps:$4 sm:$0xff]   ;;  %v1089_v4 = vld [vmem:[%s1319_s0 + $0x22] ss:$8 sps:$4 sm:$0xff]   ;;  %v669_v6 = vpack.c.bf16 %v1087_v2, %v1086_v1  ;;  %v938_v16 = vld [vmem:[%s1321_s2] ss:$0 sm:$0xff] }
  0x27   :  { %v758_v7 = vpack.c.bf16 %v1089_v4, %v1088_v3  ;;  %v1090_v8 = vld [vmem:[%s1319_s0 + $0x42] ss:$8 sps:$4 sm:$0xff]   ;;  %v1091_v9 = vld [vmem:[%s1319_s0 + $0x52] ss:$8 sps:$4 sm:$0xff]   ;;  %vm843_vm3 = vcmask 195584   ;;  %s1117_s0 = smov [#allocation2]  }
  0x28   :  { %v759_v10 = vpack.c.bf16 %v1091_v9, %v1090_v8  ;;  %s853_s22 = sshll.u32 %s1117_s0, 4  ;;  %s854_s22 = int_to_ptr.vmem [resolvable:$true] %s853_s22 }
  0x29   :  { %s1092_s2 = scalar_lea.vmem %s854_s22, 512  ;;  %p1097_p1 = scmp.lt.s32.totalorder %s854_s22, %s854_s22 }
  0x2a   :  { %p1093_p0 = scmp.ne.s32.totalorder %s854_s22, %s1092_s2  ;;  %p1098_p2 = scmp.lt.s32.totalorder %s1092_s2, %s1092_s2 }
  0x2c   :  { %p1099_p3 = por %p1098_p2, %p1097_p1 }
  0x2d   :  { %987 = vmatmul.mubr.msk.bf16.vlgmr.msra.gmra.mrb[0].mxu1 %vm71_vm2, %v308_v5  ;;  %1011 = vmatmul.mubr.msk.bf16.vlgmr.msra.gmra.mrb[0].mxu0 %vm71_vm2, %v669_v6 }
  0x2e   :  { %1015 = vmatpush3.bf16.msra.mxu0 %v769_v62  ;;  %1016 = vmatprep.mubr.msk.bf16.mxu0 %vm71_vm2, %v758_v7  ;;  %p1100_p4 = pnand %p1099_p3, %p1093_p0 }
  0x39   :  { %1017 = vmatmul.mubr.msk.bf16.vlgmr.msra.gmra.mrb[0].mxu0 %vm71_vm2, %v759_v10 }
 0x100   :  { %v988_v11 = vpop.f32.mrb[0].mxu1 }
 0x101   :  { %v354_v12 = vpop.f32.mrb[1].mxu1 }
 0x102   :  { %v989_v13 = vpop.f32.mrb[2].mxu1 }
 0x103   :  { %v357_v14 = vpop.f32.mrb[3].mxu1 }
 0x10c   :  { %v1018_v15 = vpop.f32.mrb[0].mxu0 }
 0x10d   :  { %v1020_v17 = vadd.f32 %v1018_v15, %v988_v11  ;;  %v805_v18 = vpop.f32.mrb[1].mxu0 }
 0x10e   :  { %v1021_v19 = vadd.f32 %v805_v18, %v354_v12  ;;  %v1019_v20 = vpop.f32.mrb[2].mxu0 }
 0x10f   :  { %v833_v21 = vadd.f32 %v1020_v17, %v938_v16  ;;  %v1022_v22 = vadd.f32 %v1019_v20, %v989_v13  ;;  %v808_v23 = vpop.f32.mrb[3].mxu0 }
 0x110   :  { %v831_v24 = vadd.f32 %v1021_v19, %v938_v16  ;;  %v1023_v25 = vadd.f32 %v808_v23, %v357_v14 }
 0x111   :  { %v837_v26 = vmul.f32 0.1, %v833_v21  ;;  %v834_v27 = vadd.f32 %v1022_v22, %v938_v16 }
 0x112   :  { %v835_v28 = vmul.f32 0.1, %v831_v24  ;;  %v832_v29 = vadd.f32 %v1023_v25, %v938_v16 }
 0x113   :  { %v841_v30 = vmax.f32 %v833_v21, %v837_v26  ;;  %v838_v31 = vmul.f32 0.1, %v834_v27 }
 0x114   :  { %v839_v32 = vmax.f32 %v831_v24, %v835_v28  ;;  %v836_v33 = vmul.f32 0.1, %v832_v29 }
 0x115   :  { %846 = vst.msk [vmem:[#allocation2 + $0x10] sm:$0xff] %vm843_vm3, %v841_v30  ;;  %v842_v34 = vmax.f32 %v834_v27, %v838_v31 }
 0x116   :  { %844 = vst.msk [vmem:[#allocation2] sm:$0xff] %vm843_vm3, %v839_v32  ;;  %v840_v35 = vmax.f32 %v832_v29, %v836_v33 }
 0x117   :  { %847 = vst.msk [vmem:[#allocation2 + $0x18] sm:$0xff] %vm843_vm3, %v842_v34 }
 0x118   :  { %845 = vst.msk [vmem:[#allocation2 + $0x8] sm:$0xff] %vm843_vm3, %v840_v35 }
 0x119   :  { %1103 = shalt.err (!%p1100_p4)
}
 0x11a   :  { %s1104_s25 = scalar_lea.hbm %s1322_s3, 512 }
 0x11b   :  { %p1105_p5 = scmp.ne.s32.totalorder %s1322_s3, %s1104_s25  ;;  %p1108_p6 = scmp.lt.u32.totalorder %s1104_s25, %s1322_s3 }
 0x11d   :  { %p1110_p7 = pnand %p1108_p6, %p1105_p5 }
 0x11f   :  { %1113 = shalt.err (!%p1110_p7)
}
 0x120   :  { %s1118_s30 = smov 128   ;;  %s1119_s4 = smov 8  }
 0x121   :  { %859 = dma.vmem_to_hbm [thread:$0]  %s854_s22, 512, %s1322_s3, [#allocation3], %s1118_s30, %s1118_s30, %s1119_s4  }
 0x122   :  { %1114 = dma.done.wait [#allocation3], 512  }
 0x123   :  { %1115 = vsyncadd [#allocation3], 4294966784 }
 0x124   :  { %863 = vsyncpa [#allocation3], 1 }

</bundles_post_ra>
